<compile_context>
chip_gen: v6e
topology: v6e:2x2x1
jax: 0.10.0
libtpu: 0.0.40
codegen_flags: <defaults>
</compile_context>

<pallas_src>
import jax
import jax.numpy as jnp
from jax.experimental import pallas as pl
from jax.experimental.pallas import tpu as pltpu


def _make_loss_margin_center_kernel(margin, weight_center, batch_size):
    margin = float(margin)
    wc = float(weight_center)
    inv_b = 1.0 / float(batch_size)

    def kernel(x_ref, ct_ref, csq_ref, lab_ref, out_ref):
        x = x_ref[...]            # (B, A_pad) f32
        ct = ct_ref[...]          # (A_pad, C) f32  (centers pre-transposed)
        c_sq = csq_ref[...]       # (1, C) f32
        labs = lab_ref[...]       # (B, 2) int32: [:, 0] = label, [:, 1] = other label

        B = x.shape[0]
        C = c_sq.shape[1]

        # Cross term on the MXU; no in-kernel transpose needed.
        dots = jnp.dot(x, ct, preferred_element_type=jnp.float32)   # (B, C)
        partial = c_sq - 2.0 * dots                                 # (B, C)

        classes = jax.lax.broadcasted_iota(jnp.int32, (B, C), 1)
        mask_own = labs[:, 0:1] == classes
        mask_other = labs[:, 1:2] == classes

        d_own = jnp.sum(jnp.where(mask_own, partial, 0.0), axis=1, keepdims=True)    # (B, 1)
        d_oth = jnp.sum(jnp.where(mask_other, partial, 0.0), axis=1, keepdims=True)  # (B, 1)

        # ||x||^2 appears in both distances:
        #   margin + wc*(x_sq + d_own) - (1-wc)*(x_sq + d_oth)
        #     = margin + (2*wc - 1)*x_sq + wc*d_own - (1-wc)*d_oth
        x_sq = jnp.sum(x * x, axis=1, keepdims=True)                                 # (B, 1)
        hinge = jnp.maximum(
            margin + (2.0 * wc - 1.0) * x_sq + wc * d_own - (1.0 - wc) * d_oth, 0.0)

        out_ref[0, 0] = jnp.sum(hinge) * inv_b

    return kernel


def loss_margin_center(x, centers, labels, other_labels, margin, weight_center):
    """Computes the min_margin=False forward path of LossMarginCenter."""
    # TODO(synk): min_margin=True branch (min over non-label centers) not implemented.
    B, A = x.shape
    C = centers.shape[0]

    x = x.astype(jnp.float32)
    centers = centers.astype(jnp.float32)

    # Batch-independent work hoisted out of the kernel (XLA, once per call):
    c_sq = jnp.sum(centers * centers, axis=1)[None, :]     # (1, C)
    centers_t = centers.T                                  # (A, C) — parameter transpose

    # Zero-pad the contraction axis to a multiple of 128 (no effect on the result).
    a_pad = ((A + 127) // 128) * 128
    if a_pad != A:
        x = jnp.pad(x, ((0, 0), (0, a_pad - A)))
        centers_t = jnp.pad(centers_t, ((0, a_pad - A), (0, 0)))

    # Fuse the two label vectors into one small int32 operand.
    labs = jnp.stack(
        [labels.astype(jnp.int32), other_labels.astype(jnp.int32)], axis=1)  # (B, 2)

    kernel = _make_loss_margin_center_kernel(margin, weight_center, B)

    out = pl.pallas_call(
        kernel,
        out_shape=jax.ShapeDtypeStruct((1, 1), jnp.float32),
        in_specs=[
            pl.BlockSpec(memory_space=pltpu.MemorySpace.VMEM),   # x        (B, A_pad)
            pl.BlockSpec(memory_space=pltpu.MemorySpace.VMEM),   # centers  (A_pad, C)
            pl.BlockSpec(memory_space=pltpu.MemorySpace.VMEM),   # c_sq     (1, C)
            pl.BlockSpec(memory_space=pltpu.MemorySpace.VMEM),   # labels   (B, 2)
        ],
        out_specs=pl.BlockSpec(memory_space=pltpu.MemorySpace.SMEM),
    )(x, centers_t, c_sq, labs)
    return out[0, 0]


if __name__ == "__main__":
    key = jax.random.PRNGKey(0)
    k_x, k_c, k_lab, k_idx = jax.random.split(key, 4)

    # Small shapes consistent with the module defaults: batch=8, n_classes=10, n_attributes=312.
    B, C, A = 8, 10, 312
    x = jax.random.normal(k_x, (B, A), dtype=jnp.float32)
    # nn.Parameter(torch.randn(n_classes, n_attributes)) -> deterministic normal init.
    centers = jax.random.normal(k_c, (C, A), dtype=jnp.float32)
    labels = jax.random.randint(k_lab, (B,), 0, C, dtype=jnp.int32)

    # min_margin=False path: torch.randint offset, wrapped modulo n_classes.
    # TODO(synk): torch's CPU RNG replaced with a deterministic jax.random draw (glue).
    index = jax.random.randint(k_idx, (B,), 0, C, dtype=jnp.int32)
    other_labels = (labels + index) % C

    margin = 0.5
    weight_center = 0.7

    loss = loss_margin_center(x, centers, labels, other_labels, margin, weight_center)
    loss = jax.block_until_ready(loss)

    # Pure-JAX reference check of the same semantics (expanded squared-distance form).
    all_d = (
        jnp.sum(x ** 2, axis=1, keepdims=True)
        + jnp.sum(centers ** 2, axis=1)[None, :]
        - 2.0 * (x @ centers.T)
    )
    d = all_d[jnp.arange(B), labels]
    od = all_d[jnp.arange(B), other_labels]
    ref = jnp.sum(
        jnp.maximum(margin + weight_center * d - (1.0 - weight_center) * od, 0.0)) / B
    assert jnp.allclose(loss, ref, rtol=1e-5, atol=1e-5), (loss, ref)

    print("KERNEL_OK")
</pallas_src>

<mosaic_0001>
module attributes {stable_mosaic.version = 11 : i64} {
  func.func @kernel(%arg0: memref<8x384xf32, #tpu.memory_space<vmem>>, %arg1: memref<384x10xf32, #tpu.memory_space<vmem>>, %arg2: memref<1x10xf32, #tpu.memory_space<vmem>>, %arg3: memref<8x2xi32, #tpu.memory_space<vmem>>, %arg4: memref<1x1xf32, #tpu.memory_space<smem>>) attributes {dimension_semantics = [], scalar_prefetch = 0 : i64, scratch_operands = 0 : i64, tpu.core_type = #tpu.core_type<tc>} {
    %c0 = arith.constant 0 : index
    %c0_0 = arith.constant 0 : index
    %0 = vector.load %arg0[%c0, %c0_0] : memref<8x384xf32, #tpu.memory_space<vmem>>, vector<8x384xf32>
    %c0_1 = arith.constant 0 : index
    %c0_2 = arith.constant 0 : index
    %1 = vector.load %arg1[%c0_1, %c0_2] : memref<384x10xf32, #tpu.memory_space<vmem>>, vector<384x10xf32>
    %c0_3 = arith.constant 0 : index
    %c0_4 = arith.constant 0 : index
    %2 = vector.load %arg2[%c0_3, %c0_4] : memref<1x10xf32, #tpu.memory_space<vmem>>, vector<1x10xf32>
    %c0_5 = arith.constant 0 : index
    %c0_6 = arith.constant 0 : index
    %3 = vector.load %arg3[%c0_5, %c0_6] : memref<8x2xi32, #tpu.memory_space<vmem>>, vector<8x2xi32>
    %cst = arith.constant dense<0.000000e+00> : vector<8x10xf32>
    %4 = tpu.matmul %0, %1, %cst {dimension_numbers = #tpu.dot_dimension_numbers<[1], [0], [0], [1], [0, 0, 1, 1], [], []>} : vector<8x384xf32>, vector<384x10xf32>, vector<8x10xf32> -> vector<8x10xf32>
    %cst_7 = arith.constant 2.000000e+00 : f32
    %5 = vector.broadcast %cst_7 : f32 to vector<8x10xf32>
    %6 = arith.mulf %5, %4 : vector<8x10xf32>
    %7 = vector.broadcast %2 : vector<1x10xf32> to vector<8x10xf32>
    %8 = arith.subf %7, %6 : vector<8x10xf32>
    %9 = tpu.iota {dimensions = array<i32: 1>} : vector<8x10xi32>
    %10 = vector.extract_strided_slice %3 {offsets = [0, 0], sizes = [8, 1], strides = [1, 1]} : vector<8x2xi32> to vector<8x1xi32>
    %11 = vector.broadcast %10 : vector<8x1xi32> to vector<8x10xi32>
    %12 = arith.cmpi eq, %11, %9 : vector<8x10xi32>
    %13 = vector.extract_strided_slice %3 {offsets = [0, 1], sizes = [8, 1], strides = [1, 1]} : vector<8x2xi32> to vector<8x1xi32>
    %14 = vector.broadcast %13 : vector<8x1xi32> to vector<8x10xi32>
    %15 = arith.cmpi eq, %14, %9 : vector<8x10xi32>
    %cst_8 = arith.constant 0.000000e+00 : f32
    %16 = vector.broadcast %cst_8 : f32 to vector<8x10xf32>
    %17 = arith.select %12, %8, %16 : vector<8x10xi1>, vector<8x10xf32>
    %cst_9 = arith.constant dense<0.000000e+00> : vector<8xf32>
    %18 = vector.multi_reduction <add>, %17, %cst_9 [1] : vector<8x10xf32> to vector<8xf32>
    %19 = vector.shape_cast %18 : vector<8xf32> to vector<8x1xf32>
    %cst_10 = arith.constant 0.000000e+00 : f32
    %20 = vector.broadcast %cst_10 : f32 to vector<8x10xf32>
    %21 = arith.select %15, %8, %20 : vector<8x10xi1>, vector<8x10xf32>
    %cst_11 = arith.constant dense<0.000000e+00> : vector<8xf32>
    %22 = vector.multi_reduction <add>, %21, %cst_11 [1] : vector<8x10xf32> to vector<8xf32>
    %23 = vector.shape_cast %22 : vector<8xf32> to vector<8x1xf32>
    %24 = arith.mulf %0, %0 : vector<8x384xf32>
    %cst_12 = arith.constant dense<0.000000e+00> : vector<8xf32>
    %25 = vector.multi_reduction <add>, %24, %cst_12 [1] : vector<8x384xf32> to vector<8xf32>
    %26 = vector.shape_cast %25 : vector<8xf32> to vector<8x1xf32>
    %cst_13 = arith.constant 4.000000e-01 : f32
    %27 = vector.broadcast %cst_13 : f32 to vector<8x1xf32>
    %28 = arith.mulf %27, %26 : vector<8x1xf32>
    %cst_14 = arith.constant 5.000000e-01 : f32
    %29 = vector.broadcast %cst_14 : f32 to vector<8x1xf32>
    %30 = arith.addf %29, %28 : vector<8x1xf32>
    %cst_15 = arith.constant 0.699999988 : f32
    %31 = vector.broadcast %cst_15 : f32 to vector<8x1xf32>
    %32 = arith.mulf %31, %19 : vector<8x1xf32>
    %33 = arith.addf %30, %32 : vector<8x1xf32>
    %cst_16 = arith.constant 3.000000e-01 : f32
    %34 = vector.broadcast %cst_16 : f32 to vector<8x1xf32>
    %35 = arith.mulf %34, %23 : vector<8x1xf32>
    %36 = arith.subf %33, %35 : vector<8x1xf32>
    %cst_17 = arith.constant 0.000000e+00 : f32
    %37 = vector.broadcast %cst_17 : f32 to vector<8x1xf32>
    %38 = arith.maximumf %36, %37 : vector<8x1xf32>
    %39 = vector.shape_cast %38 : vector<8x1xf32> to vector<1x8x1xf32>
    %cst_18 = arith.constant dense<0.000000e+00> : vector<1xf32>
    %40 = vector.multi_reduction <add>, %39, %cst_18 [1, 2] : vector<1x8x1xf32> to vector<1xf32>
    %41 = vector.shape_cast %40 : vector<1xf32> to vector<1x1x1xf32>
    %42 = vector.extract %41[0, 0, 0] : f32 from vector<1x1x1xf32>
    %cst_19 = arith.constant 1.250000e-01 : f32
    %43 = arith.mulf %42, %cst_19 : f32
    %c0_20 = arith.constant 0 : index
    %c0_21 = arith.constant 0 : index
    %44 = memref.load %arg4[%c0_20, %c0_21] : memref<1x1xf32, #tpu.memory_space<smem>>
    memref.store %43, %arg4[%c0_20, %c0_21] : memref<1x1xf32, #tpu.memory_space<smem>>
    return
  }
}

</mosaic_0001>

<bundles_post_ra>
// kernel: tpu_custom_call.1
= control target key start
LH: loop header
LB: loop body
LE: loop exit
PB: predicated region body
PF: predicated region fallthrough
CT: control target
= control target key end

     0   :  { %v386_v3 = vmov 0.0   ;;  %s595_s0 = inlined_call_operand.vmem [shape: f32[8,384], index: 0, kind: input, shape index: {}]   ;;  %s596_s1 = inlined_call_operand.vmem [shape: f32[384,10], index: 1, kind: input, shape index: {}]   ;;  %s597_s2 = inlined_call_operand.vmem [shape: f32[1,10], index: 2, kind: input, shape index: {}]   ;;  %s598_s3 = inlined_call_operand.vmem [shape: s32[8,2], index: 3, kind: input, shape index: {}]   ;;  %s599_s4 = inlined_call_operand.hbm [shape: f32[1,1], index: 4, kind: output, shape index: {}]  }
   0x1   :  { %v52_v0 = vld [vmem:[%s596_s1 + $0xf8] sm:$0xff]  ;;  %v51_v2 = vld [vmem:[%s596_s1 + $0xf0] sm:$0xff]  ;;  %332 = vmatprep.subr.mxu1 %v386_v3  ;;  %v50_v6 = vld [vmem:[%s596_s1 + $0xe8] sm:$0xff] }
   0x2   :  { %v36_v1 = vld [vmem:[%s596_s1 + $0x78] sm:$0xff]  ;;  %280 = vmatprep.subr.mxu0 %v52_v0  ;;  %v35_v4 = vld [vmem:[%s596_s1 + $0x70] sm:$0xff]  ;;  %v34_v8 = vld [vmem:[%s596_s1 + $0x68] sm:$0xff] }
   0x3   :  { %v68_v5 = vld [vmem:[%s596_s1 + $0x178] sm:$0xff]  ;;  %281 = vmatpush3.msra.mxu0 %v36_v1  ;;  %v67_v7 = vld [vmem:[%s596_s1 + $0x170] sm:$0xff]  ;;  %v66_v9 = vld [vmem:[%s596_s1 + $0x168] sm:$0xff] }
   0x4   :  { %333 = vmatpush3.msra.mxu1 %v68_v5  ;;  %282 = vmatprep.subr.mxu0 %v51_v2  ;;  %v49_v10 = vld [vmem:[%s596_s1 + $0xe0] sm:$0xff]  ;;  %v48_v13 = vld [vmem:[%s596_s1 + $0xd8] sm:$0xff]  ;;  %v47_v16 = vld [vmem:[%s596_s1 + $0xd0] sm:$0xff] }
   0x5   :  { %334 = vmatprep.subr.mxu1 %v386_v3  ;;  %283 = vmatpush3.msra.mxu0 %v35_v4  ;;  %v33_v11 = vld [vmem:[%s596_s1 + $0x60] sm:$0xff]  ;;  %v32_v14 = vld [vmem:[%s596_s1 + $0x58] sm:$0xff]  ;;  %v31_v17 = vld [vmem:[%s596_s1 + $0x50] sm:$0xff] }
   0x6   :  { %335 = vmatpush3.msra.mxu1 %v67_v7  ;;  %284 = vmatprep.subr.mxu0 %v50_v6  ;;  %v65_v12 = vld [vmem:[%s596_s1 + $0x160] sm:$0xff]  ;;  %v64_v15 = vld [vmem:[%s596_s1 + $0x158] sm:$0xff]  ;;  %v63_v18 = vld [vmem:[%s596_s1 + $0x150] sm:$0xff] }
   0x7   :  { %336 = vmatprep.subr.mxu1 %v386_v3  ;;  %285 = vmatpush3.msra.mxu0 %v34_v8  ;;  %v46_v19 = vld [vmem:[%s596_s1 + $0xc8] sm:$0xff]  ;;  %v45_v22 = vld [vmem:[%s596_s1 + $0xc0] sm:$0xff]  ;;  %v44_v25 = vld [vmem:[%s596_s1 + $0xb8] sm:$0xff] }
   0x8   :  { %337 = vmatpush3.msra.mxu1 %v66_v9  ;;  %286 = vmatprep.subr.mxu0 %v49_v10  ;;  %v30_v20 = vld [vmem:[%s596_s1 + $0x48] sm:$0xff]  ;;  %v29_v23 = vld [vmem:[%s596_s1 + $0x40] sm:$0xff]  ;;  %v28_v26 = vld [vmem:[%s596_s1 + $0x38] sm:$0xff] }
   0x9   :  { %338 = vmatprep.subr.mxu1 %v386_v3  ;;  %287 = vmatpush3.msra.mxu0 %v33_v11  ;;  %v62_v21 = vld [vmem:[%s596_s1 + $0x148] sm:$0xff]  ;;  %v61_v24 = vld [vmem:[%s596_s1 + $0x140] sm:$0xff]  ;;  %v60_v27 = vld [vmem:[%s596_s1 + $0x138] sm:$0xff] }
   0xa   :  { %339 = vmatpush3.msra.mxu1 %v65_v12  ;;  %288 = vmatprep.subr.mxu0 %v48_v13  ;;  %v43_v28 = vld [vmem:[%s596_s1 + $0xb0] sm:$0xff] }
   0xb   :  { %340 = vmatprep.subr.mxu1 %v386_v3  ;;  %289 = vmatpush3.msra.mxu0 %v32_v14  ;;  %v27_v29 = vld [vmem:[%s596_s1 + $0x30] sm:$0xff] }
   0xc   :  { %341 = vmatpush3.msra.mxu1 %v64_v15  ;;  %290 = vmatprep.subr.mxu0 %v47_v16  ;;  %v59_v30 = vld [vmem:[%s596_s1 + $0x130] sm:$0xff] }
   0xd   :  { %342 = vmatprep.subr.mxu1 %v386_v3  ;;  %291 = vmatpush3.msra.mxu0 %v31_v17 }
   0xe   :  { %343 = vmatpush3.msra.mxu1 %v63_v18  ;;  %292 = vmatprep.subr.mxu0 %v46_v19 }
   0xf   :  { %344 = vmatprep.subr.mxu1 %v386_v3  ;;  %293 = vmatpush3.msra.mxu0 %v30_v20 }
  0x10   :  { %345 = vmatpush3.msra.mxu1 %v62_v21  ;;  %294 = vmatprep.subr.mxu0 %v45_v22 }
  0x11   :  { %346 = vmatprep.subr.mxu1 %v386_v3  ;;  %295 = vmatpush3.msra.mxu0 %v29_v23 }
  0x12   :  { %347 = vmatpush3.msra.mxu1 %v61_v24  ;;  %296 = vmatprep.subr.mxu0 %v44_v25 }
  0x13   :  { %348 = vmatprep.subr.mxu1 %v386_v3 }
  0x14   :  { %9 = vsyncpa [#allocation3], 0  ;;  %297 = vmatpush3.msra.mxu0 %v28_v26  ;;  %349 = vmatpush3.msra.mxu1 %v60_v27  ;;  %v42_v31 = vld [vmem:[%s596_s1 + $0xa8] sm:$0xff]  ;;  %v41_v34 = vld [vmem:[%s596_s1 + $0xa0] sm:$0xff]  ;;  %vm387_vm0 = vmmov 0   ;;  %v388_v53 = vmov 0   ;;  %v219_v61 = vlaneseq }
  0x15   :  { %298 = vmatprep.subr.mxu0 %v43_v28  ;;  %350 = vmatprep.subr.mxu1 %v386_v3  ;;  %v26_v32 = vld [vmem:[%s596_s1 + $0x28] sm:$0xff]  ;;  %v25_v35 = vld [vmem:[%s596_s1 + $0x20] sm:$0xff]  ;;  %v40_v37 = vld [vmem:[%s596_s1 + $0x98] sm:$0xff]  ;;  %v389_v54 = vmov 1   ;;  %vm230_vm2 = vcmask 80896   ;;  %vm252_vm4 = vcmask 7168  }
  0x16   :  { %v58_v33 = vld [vmem:[%s596_s1 + $0x128] sm:$0xff]  ;;  %299 = vmatpush3.msra.mxu0 %v27_v29  ;;  %351 = vmatpush3.msra.mxu1 %v59_v30  ;;  %v57_v36 = vld [vmem:[%s596_s1 + $0x120] sm:$0xff]  ;;  %v24_v38 = vld [vmem:[%s596_s1 + $0x18] sm:$0xff]  ;;  %s390_s15 = smov [#allocation2]  }
  0x17   :  { %300 = vmatprep.subr.mxu0 %v42_v31  ;;  %352 = vmatprep.subr.mxu1 %v386_v3  ;;  %v56_v39 = vld [vmem:[%s596_s1 + $0x118] sm:$0xff]  ;;  %v39_v40 = vld [vmem:[%s596_s1 + $0x90] sm:$0xff]  ;;  %v38_v43 = vld [vmem:[%s596_s1 + $0x88] sm:$0xff] }
  0x18   :  { %301 = vmatpush3.msra.mxu0 %v26_v32  ;;  %353 = vmatpush3.msra.mxu1 %v58_v33  ;;  %v23_v41 = vld [vmem:[%s596_s1 + $0x10] sm:$0xff]  ;;  %v22_v44 = vld [vmem:[%s596_s1 + $0x8] sm:$0xff]  ;;  %v37_v46 = vld [vmem:[%s596_s1 + $0x80] sm:$0xff] }
  0x19   :  { %302 = vmatprep.subr.mxu0 %v41_v34  ;;  %354 = vmatprep.subr.mxu1 %v386_v3  ;;  %v55_v42 = vld [vmem:[%s596_s1 + $0x110] sm:$0xff]  ;;  %v19_v45 = vld [vmem:[%s595_s0 + $0x8] sm:$0xff]  ;;  %v21_v48 = vld [vmem:[%s596_s1] sm:$0xff] }
  0x1a   :  { %303 = vmatpush3.msra.mxu0 %v25_v35  ;;  %355 = vmatpush3.msra.mxu1 %v57_v36  ;;  %v54_v47 = vld [vmem:[%s596_s1 + $0x108] sm:$0xff]  ;;  %v18_v49 = vld [vmem:[%s595_s0] sm:$0xff]  ;;  %v20_v51 = vld [vmem:[%s595_s0 + $0x10] sm:$0xff]  ;;  %v239_v55 = vmul.f32 %v19_v45, %v19_v45 }
  0x1b   :  { %304 = vmatprep.subr.mxu0 %v40_v37  ;;  %356 = vmatprep.subr.mxu1 %v386_v3  ;;  %v53_v50 = vld [vmem:[%s596_s1 + $0x100] sm:$0xff]  ;;  %v238_v56 = vmul.f32 %v18_v49, %v18_v49  ;;  %v240_v57 = vmul.f32 %v20_v51, %v20_v51 }
  0x1c   :  { %305 = vmatpush3.msra.mxu0 %v24_v38  ;;  %357 = vmatpush3.msra.mxu1 %v56_v39  ;;  %v70_v52 = vld [vmem:[%s598_s3] sm:$0xff] }
  0x1d   :  { %306 = vmatprep.subr.mxu0 %v39_v40  ;;  %358 = vmatprep.subr.mxu1 %v386_v3  ;;  %v241_v58 = vadd.f32 %v239_v55, %v238_v56  ;;  %v279_v5 = vld [vmem:[%s597_s2] ss:$0 sm:$0xff] }
  0x1e   :  { %307 = vmatpush3.msra.mxu0 %v23_v41  ;;  %359 = vmatpush3.msra.mxu1 %v55_v42 }
  0x1f   :  { %308 = vmatprep.subr.mxu0 %v38_v43  ;;  %360 = vmatprep.subr.mxu1 %v386_v3  ;;  %v242_v59 = vadd.f32 %v241_v58, %v240_v57 }
  0x20   :  { %309 = vmatpush3.msra.mxu0 %v22_v44  ;;  %135 = vmatprep.mubr.f32.mxu0 %v19_v45 }
  0x21   :  { %310 = vmatprep.subr.mxu0 %v37_v46  ;;  %361 = vmatpush3.msra.mxu1 %v54_v47 }
  0x22   :  { %311 = vmatpush3.msra.mxu0 %v21_v48  ;;  %362 = vmatprep.subr.mxu1 %v386_v3 }
  0x23   :  { %136 = vmatmul.mubr.f32.vlgmr.msra.gmra.mxu0 %v18_v49  ;;  %363 = vmatpush3.msra.mxu1 %v53_v50 }
  0x24   :  { %364 = vmatprep.mubr.msk.f32.mxu1 %vm387_vm0, %v386_v3  ;;  %374 = vset.pattern.permute.xlu0 %v388_v53  ;;  %v220_v3 = vand.u32 127, %v219_v61 }
  0x25   :  { %365 = vmatmul.mubr.f32.vlgmr.msra.gmra.mxu1 %v20_v51  ;;  %222 = vperm.xlu0 %374, %v70_v52  }
  0x26   :  { %243 = vadd.xlane.f32.xlu1 %v242_v59 }
  0x29   :  { %375 = vset.pattern.permute.xlu0 %v389_v54 }
  0x2a   :  { %226 = vperm.xlu0 %375, %v70_v52  }
  0xa0   :  { %v223_v62 = vpop.permute.xlu0 %222 }
  0xa1   :  { %vm224_vm1 = vcmp.eq.s32.totalorder %v223_v62, %v220_v3 }
  0xa5   :  { %v227_v7 = vpop.permute.xlu0 %226 }
  0xa6   :  { %vm228_vm3 = vcmp.eq.s32.totalorder %v227_v7, %v220_v3 }
  0xaf   :  { %v244_v13 = vpop.xlane.xlu1 %243 }
  0xb0   :  { %v245_v14 = vmul.f32 0.4, %v244_v13 }
  0xb2   :  { %v246_v17 = vadd.f32 0.5, %v245_v14 }
  0xe3   :  { %v312_v60 = vpop.f32.mrf.mxu0 }
  0xe5   :  { %v313_v63 = vpop.f32.mrf.mxu0  ;;  %v207_v0 = vpop.f32.mrf.mxu1 }
  0xe6   :  { %v314_v1 = vadd.f32 %v313_v63, %v312_v60 }
  0xe7   :  { %v366_v2 = vpop.f32.mrf.mxu1 }
  0xe8   :  { %v208_v4 = vadd.f32 %v314_v1, %v207_v0 }
  0xea   :  { %v211_v6 = vmul.f32 2.0, %v208_v4 }
  0xec   :  { %v218_v8 = vsub.f32 %v279_v5, %v211_v6 }
  0xee   :  { %v229_v9 = vsel %vm224_vm1, %v218_v8, 0.0  ;;  %v234_v11 = vsel %vm228_vm3, %v218_v8, 0.0 }
  0xef   :  { %v231_v10 = vsel %vm230_vm2, %v229_v9, 0.0  ;;  %v235_v12 = vsel %vm230_vm2, %v234_v11, 0.0 }
  0xf0   :  { %232 = vadd.xlane.f32.xlu1 %v231_v10 }
  0xf4   :  { %236 = vadd.xlane.f32.xlu1 %v235_v12 }
 0x179   :  { %v233_v15 = vpop.xlane.xlu1 %232 }
 0x17a   :  { %v247_v16 = vmul.f32 0.7, %v233_v15 }
 0x17c   :  { %v248_v19 = vadd.f32 %v247_v16, %v246_v17 }
 0x17d   :  { %v237_v18 = vpop.xlane.xlu1 %236 }
 0x17e   :  { %v249_v20 = vmul.f32 0.3, %v237_v18 }
 0x180   :  { %v250_v21 = vsub.f32 %v248_v19, %v249_v20 }
 0x182   :  { %v251_v22 = vmax.f32 %v250_v21, 0.0 }
 0x184   :  { %v253_v23 = vsel %vm252_vm4, %v251_v22, 0.0 }
 0x185   :  { %254 = vadd.xlane.f32.xlu0 %v253_v23 }
 0x20e   :  { %v255_v24 = vpop.xlane.xlu0 %254 }
 0x20f   :  { %v256_v25 = vrot.slane %v255_v24, 4 }
 0x211   :  { %v257_v26 = vadd.f32 %v256_v25, %v255_v24 }
 0x213   :  { %v258_v27 = vrot.slane %v257_v26, 2 }
 0x215   :  { %v259_v28 = vadd.f32 %v258_v27, %v257_v26 }
 0x217   :  { %v260_v29 = vrot.slane %v259_v28, 1 }
 0x219   :  { %v261_v30 = vadd.f32 %v260_v29, %v259_v28 }
 0x21b   :  { %367 = vpush %v261_v30 }
 0x24c   :  { %s368_s2 = spop %367 }
 0x24d   :  { %s263_s3 = smul.f32 0.125, %s368_s2 }
 0x24f   :  { %265 = sst [smem:[#allocation2]] %s263_s3 }
 0x250   :  { %273 = dma.smem_to_hbm %s390_s15, 16, %s599_s4, [#allocation3]  }
 0x251   :  { %384 = dma.done.wait [#allocation3], 16  }
 0x252   :  { %385 = vsyncadd [#allocation3], 4294967280 }
 0x253   :  { %277 = sfence }
 0x254   :  { %278 = vsyncpa [#allocation3], 1 }

</bundles_post_ra>
